<compile_context>
chip_gen: v7x
topology: tpu7x:2x2x1
jax: 0.10.0
libtpu: 0.0.40
codegen_flags: <defaults>
</compile_context>

<pallas_src>
import jax
import jax.numpy as jnp
from jax import lax
from jax.experimental import pallas as pl
from jax.experimental.pallas import tpu as pltpu


_MATMUL_VMEM_LIMIT_BYTES = 64 * 1024 * 1024   # let big tiles through on v5e/v6e
_ATTN_VMEM_LIMIT_BYTES = 48 * 1024 * 1024     # stays under v7x's 64 MiB per-TC VMEM


def _pick_tile(dim, candidates):
    for c in candidates:
        if dim >= c and dim % c == 0:
            return c
    return dim  # fall back to the full extent (small demo shapes)


# ------------------------- tiled linear projection --------------------------

def _matmul_kernel(x_ref, w_ref, o_ref, acc_ref):
    @pl.when(pl.program_id(2) == 0)
    def _():
        acc_ref[...] = jnp.zeros_like(acc_ref)

    # bf16 operands straight from HBM tiles, f32 accumulation on the MXU.
    acc_ref[...] += jnp.dot(x_ref[...], w_ref[...],
                            preferred_element_type=jnp.float32)

    @pl.when(pl.program_id(2) == pl.num_programs(2) - 1)
    def _():
        o_ref[...] = acc_ref[...].astype(o_ref.dtype)


def pallas_linear(x2d, w):
    """(M, K) @ (K, N) tiled/pipelined bf16 matmul with f32 accumulation."""
    M, K = x2d.shape
    _, N = w.shape
    tm = _pick_tile(M, (512, 256, 128, 64, 32, 16, 8))
    tn = _pick_tile(N, (512, 256, 128))
    tk = _pick_tile(K, (1024, 512, 256, 128))
    grid = (M // tm, N // tn, K // tk)
    return pl.pallas_call(
        _matmul_kernel,
        out_shape=jax.ShapeDtypeStruct((M, N), x2d.dtype),
        grid_spec=pltpu.PrefetchScalarGridSpec(
            num_scalar_prefetch=0,
            grid=grid,
            in_specs=[
                pl.BlockSpec((tm, tk), lambda i, j, k: (i, k)),
                pl.BlockSpec((tk, tn), lambda i, j, k: (k, j)),
            ],
            out_specs=pl.BlockSpec((tm, tn), lambda i, j, k: (i, j)),
            scratch_shapes=[pltpu.VMEM((tm, tn), jnp.float32)],
        ),
        compiler_params=pltpu.CompilerParams(
            dimension_semantics=("parallel", "parallel", "arbitrary"),
            vmem_limit_bytes=_MATMUL_VMEM_LIMIT_BYTES,
        ),
    )(x2d, w)


# ------------------------------ attention kernel ----------------------------

def _make_attention_kernel(kv_fused, *, num_heads, head_dim, hidden, mask_mode):
    n_kv = 1 if kv_fused else 2
    # data refs order: q, kv source(s), [per-query lens], W_o, then output
    n_data = 1 + n_kv + (1 if mask_mode == "per_query" else 0) + 1

    def kernel(vl_ref, *refs):
        o_ref = refs[n_data]
        wo_ref = refs[n_data - 1]

        q = refs[0][0]                                  # (tq, D) bf16, pre-scaled
        if kv_fused:
            k_all = refs[1][0, :, 0:hidden]             # (Tk, D) bf16
            v_all = refs[1][0, :, hidden:2 * hidden]    # (Tk, D) bf16
        else:
            k_all = refs[1][0]
            v_all = refs[2][0]
        wo = wo_ref[...]                                # (D, D) bf16, resident

        tq = q.shape[0]
        Tk = k_all.shape[0]

        if mask_mode != "none":
            col = lax.broadcasted_iota(jnp.int32, (tq, Tk), 1)
            if mask_mode == "per_query":
                vl = refs[1 + n_kv][0]                  # (tq, 1) int32 VMEM
            else:
                vl = vl_ref[pl.program_id(0)]           # scalar int32 from SMEM
            mask = col < vl                             # (tq, Tk)

        # Static unroll over heads (fine at small H); each head's temporaries
        # are consumed immediately by the fused W_o accumulation, so no list of
        # live head outputs and no concat.
        acc = jnp.zeros((tq, hidden), jnp.float32)
        for h in range(num_heads):
            lo = h * head_dim
            hi = lo + head_dim
            qh = q[:, lo:hi]
            kh = k_all[:, lo:hi]
            vh = v_all[:, lo:hi]

            # Contract the last dims directly (no explicit k.T / XLU pass).
            s = lax.dot_general(qh, kh, (((1,), (1,)), ((), ())),
                                preferred_element_type=jnp.float32)
            if mask_mode != "none":
                s = jnp.where(mask, s, jnp.float32(-1e6))

            m = jnp.max(s, axis=-1, keepdims=True)
            e = jnp.exp(s - m)                          # f32 softmax math
            p = e * pl.reciprocal(jnp.sum(e, axis=-1, keepdims=True),
                                  approx=True)
            head = jnp.dot(p.astype(jnp.bfloat16), vh,
                           preferred_element_type=jnp.float32)     # (tq, dh)
            # Fused output projection: accumulate head @ W_o[lo:hi, :].
            acc = acc + jnp.dot(head.astype(jnp.bfloat16), wo[lo:hi, :],
                                preferred_element_type=jnp.float32)

        o_ref[0] = acc.astype(o_ref.dtype)

    return kernel


def pallas_attention(q, kv_sources, kv_fused, w_o, vl_b, vl_q, *, num_heads,
                     hidden, mask_mode, out_dtype):
    """Attention + fused W_o. Grid (B, Tq//tq); K/V blocks resident per batch.

    q:          (B, Tq, D) bf16, already scaled by 1/sqrt(head_dim) via W_q.
    kv_sources: [kv (B,Tk,2D)] if kv_fused else [k (B,Tk,D), v (B,Tk,D)].
    vl_b:       (B,) int32 per-batch valid lengths (scalar prefetch, SMEM).
    vl_q:       (B, Tq, 1) int32 per-query valid lengths, or None.
    """
    B, Tq, D = q.shape
    Tk = kv_sources[0].shape[1]
    head_dim = hidden // num_heads
    tq = _pick_tile(Tq, (256, 128))
    nq = Tq // tq

    data = [q] + list(kv_sources)
    in_specs = [pl.BlockSpec((1, tq, D), lambda b, qi, vl: (b, qi, 0))]
    in_specs += [pl.BlockSpec((1, Tk, s.shape[2]), lambda b, qi, vl: (b, 0, 0))
                 for s in kv_sources]
    if mask_mode == "per_query":
        data.append(vl_q)
        in_specs.append(pl.BlockSpec((1, tq, 1), lambda b, qi, vl: (b, qi, 0)))
    data.append(w_o)
    in_specs.append(pl.BlockSpec((hidden, hidden), lambda b, qi, vl: (0, 0)))

    kernel = _make_attention_kernel(
        kv_fused, num_heads=num_heads, head_dim=head_dim, hidden=hidden,
        mask_mode=mask_mode)

    return pl.pallas_call(
        kernel,
        out_shape=jax.ShapeDtypeStruct((B, Tq, hidden), out_dtype),
        grid_spec=pltpu.PrefetchScalarGridSpec(
            num_scalar_prefetch=1,
            grid=(B, nq),
            in_specs=in_specs,
            out_specs=pl.BlockSpec((1, tq, hidden), lambda b, qi, vl: (b, qi, 0)),
        ),
        compiler_params=pltpu.CompilerParams(
            dimension_semantics=("parallel", "parallel"),
            vmem_limit_bytes=_ATTN_VMEM_LIMIT_BYTES,
        ),
    )(vl_b, *data)


# ------------------------------- module wrapper ------------------------------

class MultiHeadAttention:
    """Mirrors the PyTorch MultiHeadAttention (bias=False, eval mode)."""

    def __init__(self, num_hiddens, num_heads, dropout=0.0, bias=False, *, key):
        assert num_hiddens % num_heads == 0
        assert not bias  # TODO(synk): bias path not implemented (spec uses bias=False)
        self.num_hiddens = num_hiddens
        self.num_heads = num_heads
        head_dim = num_hiddens // num_heads
        ks = jax.random.split(key, 4)
        bound = 1.0 / (num_hiddens ** 0.5)

        def init(k):
            w = jax.random.uniform(k, (num_hiddens, num_hiddens), jnp.float32,
                                   -bound, bound)
            return w.astype(jnp.bfloat16)           # bf16 weights end-to-end

        self.W_q, self.W_k, self.W_v, self.W_o = (init(k) for k in ks)
        # Kernel-side weights: 1/sqrt(head_dim) folded into W_q (scaled in f32,
        # then re-quantized), and K/V fused into one (D, 2D) projection.
        scale = 1.0 / float(head_dim) ** 0.5
        self._W_q_scaled = (self.W_q.astype(jnp.float32) * scale).astype(jnp.bfloat16)
        self._W_kv = jnp.concatenate([self.W_k, self.W_v], axis=1)

    def _proj(self, x_bf16, W):
        B, T, Din = x_bf16.shape
        y = pallas_linear(x_bf16.reshape(B * T, Din), W)
        return y.reshape(B, T, -1)

    def __call__(self, queries, keys, values, valid_lens):
        D = self.num_hiddens
        B, Tq, _ = queries.shape

        qb = queries.astype(jnp.bfloat16)
        kb = qb if keys is queries else keys.astype(jnp.bfloat16)

        q = self._proj(qb, self._W_q_scaled)                   # (B, Tq, D), scaled
        if keys is values:                                     # covers self-attn too
            kv = self._proj(kb, self._W_kv)                    # (B, Tk, 2D)
            kv_sources, kv_fused = [kv], True
        else:
            vb = values.astype(jnp.bfloat16)
            k = self._proj(kb, self.W_k)
            v = self._proj(vb, self.W_v)
            kv_sources, kv_fused = [k, v], False

        if valid_lens is None:
            mask_mode, vl_b, vl_q = "none", jnp.zeros((B,), jnp.int32), None
        elif valid_lens.ndim == 1:
            mask_mode, vl_b, vl_q = "per_batch", valid_lens.astype(jnp.int32), None
        else:
            mask_mode = "per_query"
            vl_b = jnp.zeros((B,), jnp.int32)
            vl_q = valid_lens.astype(jnp.int32).reshape(B, Tq, 1)

        # W_o is fused into the attention kernel (no ctx HBM round trip).
        return pallas_attention(q, kv_sources, kv_fused, self.W_o, vl_b, vl_q,
                                num_heads=self.num_heads, hidden=D,
                                mask_mode=mask_mode, out_dtype=queries.dtype)


# --------------------------- plain-JAX reference -----------------------------

def reference_forward(mha, queries, keys, values, valid_lens):
    H = mha.num_heads
    Wq = mha.W_q.astype(jnp.float32)
    Wk = mha.W_k.astype(jnp.float32)
    Wv = mha.W_v.astype(jnp.float32)
    Wo = mha.W_o.astype(jnp.float32)

    def proj(x, W):
        return jnp.einsum("btd,dh->bth", x, W)

    def t_qkv(X):
        B, T, _ = X.shape
        return (X.reshape(B, T, H, -1).transpose(0, 2, 1, 3)
                 .reshape(B * H, T, -1))

    Q = t_qkv(proj(queries, Wq))
    K = t_qkv(proj(keys, Wk))
    V = t_qkv(proj(values, Wv))
    d = Q.shape[-1]
    scores = jnp.einsum("bqd,bkd->bqk", Q, K) / (d ** 0.5)
    if valid_lens is not None:
        vl = jnp.repeat(valid_lens, H, axis=0)
        if vl.ndim == 1:
            vl = vl[:, None]
        col = jnp.arange(scores.shape[-1])[None, None, :]
        scores = jnp.where(col < vl[:, :, None], scores, -1e6)
    w = jax.nn.softmax(scores, axis=-1)
    out = jnp.einsum("bqk,bkd->bqd", w, V)
    BH, T, dh = out.shape
    B = BH // H
    out = out.reshape(B, H, T, dh).transpose(0, 2, 1, 3).reshape(B, T, -1)
    return jnp.einsum("btd,dh->bth", out, Wo)


# ------------------------------------ main -----------------------------------

if __name__ == "__main__":
    B, T, Tkv = 2, 8, 16
    num_hiddens, num_heads = 32, 4

    root = jax.random.PRNGKey(0)
    k_mod, k_x, k_y, k_z = jax.random.split(root, 4)

    mha = MultiHeadAttention(num_hiddens, num_heads, dropout=0.0, bias=False,
                             key=k_mod)

    X = jax.random.normal(k_x, (B, T, num_hiddens), jnp.float32)
    Y = jax.random.normal(k_y, (B, Tkv, num_hiddens), jnp.float32)
    Z = jax.random.normal(k_z, (B, Tkv, num_hiddens), jnp.float32)

    cases = [
        ("self-attn, 1-D lens (fused KV)",
         X, X, X, jnp.array([3, 5], jnp.int32)),
        ("cross-attn, keys is values (fused KV)",
         X, Y, Y, jnp.array([2, 11], jnp.int32)),
        ("self-attn, per-query 2-D lens",
         X, X, X, jnp.tile(jnp.arange(1, T + 1, dtype=jnp.int32)[None, :], (B, 1))),
        ("distinct q/k/v, no mask",
         X, Y, Z, None),
    ]

    for name, q, k, v, vl in cases:
        out = jax.block_until_ready(mha(q, k, v, vl))
        ref = reference_forward(mha, q, k, v, vl)
        assert out.shape == ref.shape, f"shape mismatch: {name}"
        # bf16 activations/weights + approx reciprocal vs. a pure-f32 reference.
        assert jnp.allclose(out, ref, atol=5e-2, rtol=5e-2), f"mismatch: {name}"

    print("KERNEL_OK")
</pallas_src>

<mosaic_0001>
module attributes {stable_mosaic.version = 11 : i64} {
  func.func @_matmul_kernel(%arg0: i32, %arg1: i32, %arg2: i32, %arg3: memref<16x32xbf16, #tpu.memory_space<vmem>>, %arg4: memref<32x32xbf16, #tpu.memory_space<vmem>>, %arg5: memref<16x32xbf16, #tpu.memory_space<vmem>>, %arg6: memref<16x32xf32, #tpu.memory_space<vmem>>) attributes {dimension_semantics = [#tpu.dimension_semantics<parallel>, #tpu.dimension_semantics<parallel>, #tpu.dimension_semantics<arbitrary>], iteration_bounds = array<i64: 1, 1, 1>, scalar_prefetch = 0 : i64, scratch_operands = 1 : i64, tpu.core_type = #tpu.core_type<tc>, window_params = [{transform_indices = @transform_0, window_bounds = array<i64: 16, 32>}, {transform_indices = @transform_1, window_bounds = array<i64: 32, 32>}, {transform_indices = @transform_2, window_bounds = array<i64: 16, 32>}]} {
    %c0_i32 = arith.constant 0 : i32
    %0 = arith.cmpi eq, %arg2, %c0_i32 : i32
    %1 = arith.extui %0 : i1 to i32
    %c0_i32_0 = arith.constant 0 : i32
    %2 = arith.cmpi ne, %1, %c0_i32_0 : i32
    scf.if %2 {
      %cst_10 = arith.constant 0.000000e+00 : f32
      %12 = vector.broadcast %cst_10 : f32 to vector<16x32xf32>
      %c0_11 = arith.constant 0 : index
      %c0_12 = arith.constant 0 : index
      %13 = vector.load %arg6[%c0_11, %c0_12] : memref<16x32xf32, #tpu.memory_space<vmem>>, vector<16x32xf32>
      tpu.vector_store %arg6[%c0_11, %c0_12], %12 {strides = array<i32>} : memref<16x32xf32, #tpu.memory_space<vmem>>, vector<16x32xf32>,
    } else {
    }
    %c0 = arith.constant 0 : index
    %c0_1 = arith.constant 0 : index
    %3 = vector.load %arg6[%c0, %c0_1] : memref<16x32xf32, #tpu.memory_space<vmem>>, vector<16x32xf32>
    %c0_2 = arith.constant 0 : index
    %c0_3 = arith.constant 0 : index
    %4 = vector.load %arg3[%c0_2, %c0_3] : memref<16x32xbf16, #tpu.memory_space<vmem>>, vector<16x32xbf16>
    %c0_4 = arith.constant 0 : index
    %c0_5 = arith.constant 0 : index
    %5 = vector.load %arg4[%c0_4, %c0_5] : memref<32x32xbf16, #tpu.memory_space<vmem>>, vector<32x32xbf16>
    %cst = arith.constant dense<0.000000e+00> : vector<16x32xf32>
    %6 = tpu.matmul %4, %5, %cst {dimension_numbers = #tpu.dot_dimension_numbers<[1], [0], [0], [1], [0, 0, 1, 1], [], []>} : vector<16x32xbf16>, vector<32x32xbf16>, vector<16x32xf32> -> vector<16x32xf32>
    %7 = arith.addf %3, %6 : vector<16x32xf32>
    %c0_6 = arith.constant 0 : index
    %c0_7 = arith.constant 0 : index
    %8 = vector.load %arg6[%c0_6, %c0_7] : memref<16x32xf32, #tpu.memory_space<vmem>>, vector<16x32xf32>
    tpu.vector_store %arg6[%c0_6, %c0_7], %7 {strides = array<i32>} : memref<16x32xf32, #tpu.memory_space<vmem>>, vector<16x32xf32>,
    %c0_i32_8 = arith.constant 0 : i32
    %9 = arith.cmpi eq, %arg2, %c0_i32_8 : i32
    %10 = arith.extui %9 : i1 to i32
    %c0_i32_9 = arith.constant 0 : i32
    %11 = arith.cmpi ne, %10, %c0_i32_9 : i32
    scf.if %11 {
      %c0_10 = arith.constant 0 : index
      %c0_11 = arith.constant 0 : index
      %12 = vector.load %arg6[%c0_10, %c0_11] : memref<16x32xf32, #tpu.memory_space<vmem>>, vector<16x32xf32>
      %13 = arith.truncf %12 : vector<16x32xf32> to vector<16x32xbf16>
      %c0_12 = arith.constant 0 : index
      %c0_13 = arith.constant 0 : index
      %14 = vector.load %arg5[%c0_12, %c0_13] : memref<16x32xbf16, #tpu.memory_space<vmem>>, vector<16x32xbf16>
      tpu.vector_store %arg5[%c0_12, %c0_13], %13 {strides = array<i32>} : memref<16x32xbf16, #tpu.memory_space<vmem>>, vector<16x32xbf16>,
    } else {
    }
    return
  }
  func.func @transform_0(%arg0: i32, %arg1: i32, %arg2: i32) -> (i32, i32) {
    %c0_i32 = arith.constant 0 : i32
    return %arg0, %arg2 : i32, i32
  }
  func.func @transform_1(%arg0: i32, %arg1: i32, %arg2: i32) -> (i32, i32) {
    %c0_i32 = arith.constant 0 : i32
    return %arg2, %arg1 : i32, i32
  }
  func.func @transform_2(%arg0: i32, %arg1: i32, %arg2: i32) -> (i32, i32) {
    %c0_i32 = arith.constant 0 : i32
    return %arg0, %arg1 : i32, i32
  }
}

</mosaic_0001>

<bundles_post_ra>
// kernel: tpu_custom_call.1
= control target key start
LH: loop header
LB: loop body
LE: loop exit
PB: predicated region body
PF: predicated region fallthrough
CT: control target
= control target key end

     0   :  { %7 = vsyncpa [#allocation4], 0  ;;  %s329_s0 = inlined_call_operand.hbm [shape: bf16[16,32], index: 0, kind: input, shape index: {}]   ;;  %s330_s1 = inlined_call_operand.hbm [shape: bf16[32,32], index: 1, kind: input, shape index: {}]   ;;  %s331_s2 = inlined_call_operand.hbm [shape: bf16[16,32], index: 2, kind: output, shape index: {}]  }
   0x1   :  { %8 = vsyncpa [#allocation7], 0 }
   0x2   :  { %9 = vsyncpa [#allocation5], 0  ;;  %s257_s9 = smov [#allocation3]   ;;  %s185_s13 = scalar_lea.hbm %s329_s0, 128 }
   0x3   :  { %s15_s10 = sshll.u32 %s257_s9, 4  ;;  %p186_p0 = scmp.ne.s32.totalorder %s329_s0, %s185_s13  ;;  %s16_s10 = int_to_ptr.vmem [resolvable:$true] %s15_s10 }
   0x4   :  { %p189_p1 = scmp.lt.u32.totalorder %s185_s13, %s329_s0 }
   0x6   :  { %p191_p2 = pnand %p189_p1, %p186_p0 }
   0x8   :  { %194 = shalt.err (!%p191_p2)
}
   0x9   :  { %s195_s18 = scalar_lea.vmem %s16_s10, 128  ;;  %p200_p4 = scmp.lt.s32.totalorder %s16_s10, %s16_s10 }
   0xa   :  { %p196_p3 = scmp.ne.s32.totalorder %s16_s10, %s195_s18  ;;  %p201_p5 = scmp.lt.s32.totalorder %s195_s18, %s195_s18 }
   0xc   :  { %p202_p6 = por %p201_p5, %p200_p4 }
   0xe   :  { %p203_p7 = pnand %p202_p6, %p196_p3 }
  0x10   :  { %206 = shalt.err (!%p203_p7)
}
  0x11   :  { %s258_s19 = smov 64   ;;  %s259_s20 = smov 4  }
  0x12   :  { %21 = dma.hbm_to_vmem [thread:$0]  %s329_s0, 128, %s16_s10, [#allocation4], %s258_s19, %s258_s19, %s259_s20  }
  0x13   :  { %s260_s23 = smov [#allocation6]   ;;  %s207_s27 = scalar_lea.hbm %s330_s1, 256 }
  0x14   :  { %s27_s24 = sshll.u32 %s260_s23, 4  ;;  %p208_p8 = scmp.ne.s32.totalorder %s330_s1, %s207_s27  ;;  %s28_s24 = int_to_ptr.vmem [resolvable:$true] %s27_s24 }
  0x15   :  { %p211_p9 = scmp.lt.u32.totalorder %s207_s27, %s330_s1 }
  0x17   :  { %p213_p10 = pnand %p211_p9, %p208_p8 }
  0x19   :  { %216 = shalt.err (!%p213_p10)
}
  0x1a   :  { %s217_s4 = scalar_lea.vmem %s28_s24, 256  ;;  %p222_p12 = scmp.lt.s32.totalorder %s28_s24, %s28_s24 }
  0x1b   :  { %p218_p11 = scmp.ne.s32.totalorder %s28_s24, %s217_s4  ;;  %p223_p13 = scmp.lt.s32.totalorder %s217_s4, %s217_s4 }
  0x1d   :  { %p224_p0 = por %p223_p13, %p222_p12 }
  0x1f   :  { %p225_p1 = pnand %p224_p0, %p218_p11 }
  0x21   :  { %228 = shalt.err (!%p225_p1)
}
  0x22   :  { %33 = dma.hbm_to_vmem [thread:$0]  %s330_s1, 256, %s28_s24, [#allocation7], %s258_s19, %s258_s19, %s259_s20  }
  0x23   :  { %251 = dma.done.wait [#allocation4], 128  }
  0x24   :  { %252 = vsyncadd [#allocation4], 4294967168 }
  0x25   :  { %253 = dma.done.wait [#allocation7], 256  }
  0x26   :  { %254 = vsyncadd [#allocation7], 4294967040  ;;  %vm45_vm0 = vcmask 261120   ;;  %v261_v0 = vmov 0.0   ;;  %vm262_vm1 = vmmov 0   ;;  %v182_v1 = vld [vmem:[#allocation6] sm:$0xff]  }
  0x27   :  { %167 = vmatprep.subr.bf16.mxu0 %v261_v0  ;;  %171 = vmatprep.mubr.msk.bf16.mxu0 %vm262_vm1, %v261_v0  ;;  %46 = vst.msk [vmem:[#allocation2] sm:$0xff] %vm45_vm0, %v261_v0  ;;  %47 = vst.msk [vmem:[#allocation2 + $0x8] sm:$0xff] %vm45_vm0, %v261_v0  ;;  %v183_v2 = vld [vmem:[#allocation6 + $0x8] sm:$0xff]   ;;  %v184_v3 = vld [vmem:[#allocation3] sm:$0xff]   ;;  %vm135_vm2 = vcmask 257024   ;;  %s263_s1 = smov [#allocation8]  }
  0x28   :  { %168 = vmatpush3.bf16.msra.mxu0 %v182_v1  ;;  %s143_s6 = sshll.u32 %s263_s1, 4  ;;  %s144_s6 = int_to_ptr.vmem [resolvable:$true] %s143_s6 }
  0x29   :  { %169 = vmatprep.subr.bf16.mxu0 %v261_v0  ;;  %s229_s7 = scalar_lea.vmem %s144_s6, 128  ;;  %p234_p3 = scmp.lt.s32.totalorder %s144_s6, %s144_s6 }
  0x2a   :  { %p230_p2 = scmp.ne.s32.totalorder %s144_s6, %s229_s7  ;;  %p235_p4 = scmp.lt.s32.totalorder %s229_s7, %s229_s7 }
  0x2c   :  { %170 = vmatpush3.bf16.msra.mxu0 %v183_v2  ;;  %p236_p5 = por %p235_p4, %p234_p3 }
  0x2e   :  { %v48_v4 = vld [vmem:[#allocation2] sm:$0xff]  ;;  %v49_v6 = vld [vmem:[#allocation2 + $0x8] sm:$0xff]  ;;  %p237_p6 = pnand %p236_p5, %p230_p2 }
  0x2f   :  { %172 = vmatmul.mubr.msk.bf16.vlgmr.msra.gmra.mrb[0].mxu0 %vm45_vm0, %v184_v3 }
 0x102   :  { %v111_v5 = vpop.f32.mrb[0].mxu0 }
 0x103   :  { %v118_v7 = vadd.f32 %v111_v5, %v48_v4  ;;  %v173_v8 = vpop.f32.mrb[1].mxu0 }
 0x104   :  { %v114_v9 = vpop.f32.mrb[2].mxu0 }
 0x105   :  { %120 = vst.msk [vmem:[#allocation2] sm:$0xff] %vm45_vm0, %v118_v7  ;;  %v119_v10 = vadd.f32 %v114_v9, %v49_v6  ;;  %v174_v11 = vpop.f32.mrb[3].mxu0 }
 0x107   :  { %121 = vst.msk [vmem:[#allocation2 + $0x8] sm:$0xff] %vm45_vm0, %v119_v10 }
 0x10c   :  { %v125_v12 = vld [vmem:[#allocation2] sm:$0xff] }
 0x10d   :  { %v162_v13 = vpack.c.bf16 %v125_v12, %v125_v12 }
 0x10e   :  { %v126_v14 = vld [vmem:[#allocation2 + $0x8] sm:$0xff] }
 0x10f   :  { %v163_v15 = vpack.c.bf16 %v126_v14, %v126_v14  ;;  %136 = vst.msk [vmem:[#allocation8] sm:$0xf] %vm135_vm2, %v162_v13 }
 0x111   :  { %137 = vst.msk [vmem:[#allocation8 + $0x4] sm:$0xf] %vm135_vm2, %v163_v15 }
 0x112   :  { %240 = shalt.err (!%p237_p6)
}
 0x113   :  { %s241_s10 = scalar_lea.hbm %s331_s2, 128 }
 0x114   :  { %p242_p7 = scmp.ne.s32.totalorder %s331_s2, %s241_s10  ;;  %p245_p8 = scmp.lt.u32.totalorder %s241_s10, %s331_s2 }
 0x116   :  { %p247_p9 = pnand %p245_p8, %p242_p7 }
 0x118   :  { %250 = shalt.err (!%p247_p9)
}
 0x119   :  { %149 = dma.vmem_to_hbm [thread:$0]  %s144_s6, 128, %s331_s2, [#allocation5], %s258_s19, %s258_s19, %s259_s20  }
 0x11a   :  { %255 = dma.done.wait [#allocation5], 128  }
 0x11b   :  { %256 = vsyncadd [#allocation5], 4294967168 }
 0x11c   :  { %153 = vsyncpa [#allocation4], 1 }
 0x11d   :  { %154 = vsyncpa [#allocation7], 1 }
 0x11e   :  { %155 = vsyncpa [#allocation5], 1 }

</bundles_post_ra>
